<compile_context>
chip_gen: v5e
topology: v5e:2x2
jax: 0.10.0
libtpu: 0.0.40
codegen_flags: <defaults>
</compile_context>

<pallas_src>
import jax
import jax.numpy as jnp
from jax.experimental import pallas as pl
from jax.experimental.pallas import tpu as pltpu

IN_DIM = 21 * 3   # 63
H1 = 128
H2 = 64
OUT_DIM = 4

H2_PAD = 128      # fc2 output / fc3 contraction padded to full lane width (exact: pads are 0)
MAX_TM = 2048     # max batch tile (multiple of 8)
VMEM_LIMIT = 32 * 1024 * 1024   # explicit scoped-VMEM budget (usage ~<8 MiB at TM=2048)


def _round_up(n, m):
    return ((n + m - 1) // m) * m


def _choose_tm(n_rows):
    """Batch tile: multiple of 8, capped at MAX_TM; for larger batches prefer >=2 grid
    steps so v7x's two TensorCores both get work (no-op on single-TC v5e/v6e)."""
    b8 = _round_up(n_rows, 8)
    if b8 <= 256:
        return b8
    half = _round_up((b8 + 1) // 2, 8)
    return min(MAX_TM, half)


def _mlp_kernel(x_ref, w1_ref, b1_ref, w2_ref, b2_ref, w3_ref, b3_ref, o_ref):
    # x: (TM, 63) f32 -> cast to bf16 in-kernel (hidden under the x DMA).
    x = x_ref[...].astype(jnp.bfloat16)

    # fc1 + ReLU  (bf16 x bf16 -> f32 accumulate on MXU)
    h1 = jnp.dot(x, w1_ref[...], preferred_element_type=jnp.float32) + b1_ref[...]
    h1 = jnp.maximum(h1, 0.0).astype(jnp.bfloat16)

    # fc2 + ReLU  (output padded to 128 lanes; padded cols are exactly 0 after ReLU)
    h2 = jnp.dot(h1, w2_ref[...], preferred_element_type=jnp.float32) + b2_ref[...]
    h2 = jnp.maximum(h2, 0.0).astype(jnp.bfloat16)

    # fc3 (no activation); w3 padded rows are 0, output is compact (TM, 4)
    o = jnp.dot(h2, w3_ref[...], preferred_element_type=jnp.float32) + b3_ref[...]
    o_ref[...] = o.astype(o_ref.dtype)


def _prepare_params(params):
    """Cast weights to bf16 and zero-pad H2 to lane width. Pure glue (tiny XLA ops)."""
    w1, b1, w2, b2, w3, b3 = params

    w1_p = w1.astype(jnp.bfloat16)                                   # (63, 128)
    b1_p = b1.reshape(1, H1).astype(jnp.float32)                     # (1, 128)

    w2_p = jnp.zeros((H1, H2_PAD), jnp.float32).at[:, :H2].set(w2)   # (128, 128)
    w2_p = w2_p.astype(jnp.bfloat16)
    b2_p = jnp.zeros((1, H2_PAD), jnp.float32).at[0, :H2].set(b2)

    w3_p = jnp.zeros((H2_PAD, OUT_DIM), jnp.float32).at[:H2, :].set(w3)
    w3_p = w3_p.astype(jnp.bfloat16)                                 # (128, 4)
    b3_p = b3.reshape(1, OUT_DIM).astype(jnp.float32)                # (1, 4)

    return w1_p, b1_p, w2_p, b2_p, w3_p, b3_p


def gesture_classifier_forward(x, params):
    """x: (B, 21, 3) or (B, 63) float32. Returns (B, 4) float32 logits."""
    x2d = x.reshape(-1, IN_DIM)            # same as torch x.view(-1, 63); free reshape
    B = x2d.shape[0]

    TM = _choose_tm(B)
    grid = (pl.cdiv(B, TM),)               # partial edge block masked by Pallas; no jnp.pad

    w1_p, b1_p, w2_p, b2_p, w3_p, b3_p = _prepare_params(params)

    const = lambda i: (0, 0)               # weights/biases resident across all grid steps

    out = pl.pallas_call(
        _mlp_kernel,
        out_shape=jax.ShapeDtypeStruct((B, OUT_DIM), jnp.float32),
        grid=grid,
        in_specs=[
            pl.BlockSpec((TM, IN_DIM), lambda i: (i, 0)),     # x tile (batch-tiled, f32)
            pl.BlockSpec((IN_DIM, H1), const),                # w1
            pl.BlockSpec((1, H1), const),                     # b1
            pl.BlockSpec((H1, H2_PAD), const),                # w2 (H2 padded)
            pl.BlockSpec((1, H2_PAD), const),                 # b2 (H2 padded)
            pl.BlockSpec((H2_PAD, OUT_DIM), const),           # w3 (rows padded, cols compact)
            pl.BlockSpec((1, OUT_DIM), const),                # b3
        ],
        out_specs=pl.BlockSpec((TM, OUT_DIM), lambda i: (i, 0)),
        compiler_params=pltpu.CompilerParams(
            dimension_semantics=("parallel",),
            vmem_limit_bytes=VMEM_LIMIT,
        ),
    )(x2d, w1_p, b1_p, w2_p, b2_p, w3_p, b3_p)

    return out


def init_params(key):
    """Deterministic synthetic params; shapes match the PyTorch module
    (stored transposed: (in, out))."""
    k1, k2, k3, k4, k5, k6 = jax.random.split(key, 6)
    s1 = 1.0 / jnp.sqrt(IN_DIM)
    s2 = 1.0 / jnp.sqrt(H1)
    s3 = 1.0 / jnp.sqrt(H2)
    w1 = jax.random.uniform(k1, (IN_DIM, H1), jnp.float32, -s1, s1)
    b1 = jax.random.uniform(k2, (H1,), jnp.float32, -s1, s1)
    w2 = jax.random.uniform(k3, (H1, H2), jnp.float32, -s2, s2)
    b2 = jax.random.uniform(k4, (H2,), jnp.float32, -s2, s2)
    w3 = jax.random.uniform(k5, (H2, OUT_DIM), jnp.float32, -s3, s3)
    b3 = jax.random.uniform(k6, (OUT_DIM,), jnp.float32, -s3, s3)
    return (w1, b1, w2, b2, w3, b3)


def _reference_forward_bf16(x, params):
    """Pure-JAX reference using the same bf16-weights / f32-accumulate math as the kernel."""
    w1, b1, w2, b2, w3, b3 = params
    h = x.reshape(-1, IN_DIM).astype(jnp.bfloat16)
    h = jnp.dot(h, w1.astype(jnp.bfloat16), preferred_element_type=jnp.float32) + b1
    h = jnp.maximum(h, 0.0).astype(jnp.bfloat16)
    h = jnp.dot(h, w2.astype(jnp.bfloat16), preferred_element_type=jnp.float32) + b2
    h = jnp.maximum(h, 0.0).astype(jnp.bfloat16)
    return jnp.dot(h, w3.astype(jnp.bfloat16), preferred_element_type=jnp.float32) + b3


def _reference_forward_f32(x, params):
    """Full-precision reference (the original PyTorch semantics)."""
    w1, b1, w2, b2, w3, b3 = params
    h = x.reshape(-1, IN_DIM)
    h = jnp.maximum(h @ w1 + b1, 0.0)
    h = jnp.maximum(h @ w2 + b2, 0.0)
    return h @ w3 + b3


if __name__ == "__main__":
    key = jax.random.PRNGKey(0)
    pkey, xkey = jax.random.split(key)
    params = init_params(pkey)

    # Small batch of hand landmarks: (B, 21, 3), like MediaPipe hand keypoints.
    B = 8
    x = jax.random.normal(xkey, (B, 21, 3), dtype=jnp.float32)

    out = gesture_classifier_forward(x, params)
    out = jax.block_until_ready(out)
    assert out.shape == (B, OUT_DIM)

    # Tight check vs a reference that uses identical bf16/f32-accumulate math.
    ref_bf16 = _reference_forward_bf16(x, params)
    assert jnp.allclose(out, ref_bf16, atol=1e-3, rtol=1e-3), "mismatch vs bf16 JAX reference"

    # Looser check vs the original full-f32 PyTorch-equivalent math.
    ref_f32 = _reference_forward_f32(x, params)
    assert jnp.allclose(out, ref_f32, atol=3e-2, rtol=3e-2), "mismatch vs f32 JAX reference"

    print("KERNEL_OK")
</pallas_src>

<mosaic_0001>
module attributes {stable_mosaic.version = 11 : i64} {
  func.func @_mlp_kernel(%arg0: i32, %arg1: memref<8x63xf32, #tpu.memory_space<vmem>>, %arg2: memref<63x128xbf16, #tpu.memory_space<vmem>>, %arg3: memref<1x128xf32, #tpu.memory_space<vmem>>, %arg4: memref<128x128xbf16, #tpu.memory_space<vmem>>, %arg5: memref<1x128xf32, #tpu.memory_space<vmem>>, %arg6: memref<128x4xbf16, #tpu.memory_space<vmem>>, %arg7: memref<1x4xf32, #tpu.memory_space<vmem>>, %arg8: memref<8x4xf32, #tpu.memory_space<vmem>>) attributes {dimension_semantics = [#tpu.dimension_semantics<parallel>], iteration_bounds = array<i64: 1>, scalar_prefetch = 0 : i64, scratch_operands = 0 : i64, tpu.core_type = #tpu.core_type<tc>, window_params = [{transform_indices = @transform_0, window_bounds = array<i64: 8, 63>}, {pipeline_mode = #tpu.pipeline_mode<synchronous>, transform_indices = @transform_1, window_bounds = array<i64: 63, 128>}, {pipeline_mode = #tpu.pipeline_mode<synchronous>, transform_indices = @transform_2, window_bounds = array<i64: 1, 128>}, {pipeline_mode = #tpu.pipeline_mode<synchronous>, transform_indices = @transform_3, window_bounds = array<i64: 128, 128>}, {pipeline_mode = #tpu.pipeline_mode<synchronous>, transform_indices = @transform_4, window_bounds = array<i64: 1, 128>}, {pipeline_mode = #tpu.pipeline_mode<synchronous>, transform_indices = @transform_5, window_bounds = array<i64: 128, 4>}, {pipeline_mode = #tpu.pipeline_mode<synchronous>, transform_indices = @transform_6, window_bounds = array<i64: 1, 4>}, {transform_indices = @transform_7, window_bounds = array<i64: 8, 4>}]} {
    %c0 = arith.constant 0 : index
    %c0_0 = arith.constant 0 : index
    %0 = vector.load %arg1[%c0, %c0_0] : memref<8x63xf32, #tpu.memory_space<vmem>>, vector<8x63xf32>
    %1 = arith.truncf %0 : vector<8x63xf32> to vector<8x63xbf16>
    %c0_1 = arith.constant 0 : index
    %c0_2 = arith.constant 0 : index
    %2 = vector.load %arg2[%c0_1, %c0_2] : memref<63x128xbf16, #tpu.memory_space<vmem>>, vector<63x128xbf16>
    %cst = arith.constant dense<0.000000e+00> : vector<8x128xf32>
    %3 = tpu.matmul %1, %2, %cst {dimension_numbers = #tpu.dot_dimension_numbers<[1], [0], [0], [1], [0, 0, 1, 1], [], []>} : vector<8x63xbf16>, vector<63x128xbf16>, vector<8x128xf32> -> vector<8x128xf32>
    %c0_3 = arith.constant 0 : index
    %c0_4 = arith.constant 0 : index
    %4 = vector.load %arg3[%c0_3, %c0_4] : memref<1x128xf32, #tpu.memory_space<vmem>>, vector<1x128xf32>
    %5 = vector.broadcast %4 : vector<1x128xf32> to vector<8x128xf32>
    %6 = arith.addf %3, %5 : vector<8x128xf32>
    %cst_5 = arith.constant 0.000000e+00 : f32
    %7 = vector.broadcast %cst_5 : f32 to vector<8x128xf32>
    %8 = arith.maximumf %6, %7 : vector<8x128xf32>
    %9 = arith.truncf %8 : vector<8x128xf32> to vector<8x128xbf16>
    %c0_6 = arith.constant 0 : index
    %c0_7 = arith.constant 0 : index
    %10 = vector.load %arg4[%c0_6, %c0_7] : memref<128x128xbf16, #tpu.memory_space<vmem>>, vector<128x128xbf16>
    %cst_8 = arith.constant dense<0.000000e+00> : vector<8x128xf32>
    %11 = tpu.matmul %9, %10, %cst_8 {dimension_numbers = #tpu.dot_dimension_numbers<[1], [0], [0], [1], [0, 0, 1, 1], [], []>} : vector<8x128xbf16>, vector<128x128xbf16>, vector<8x128xf32> -> vector<8x128xf32>
    %c0_9 = arith.constant 0 : index
    %c0_10 = arith.constant 0 : index
    %12 = vector.load %arg5[%c0_9, %c0_10] : memref<1x128xf32, #tpu.memory_space<vmem>>, vector<1x128xf32>
    %13 = vector.broadcast %12 : vector<1x128xf32> to vector<8x128xf32>
    %14 = arith.addf %11, %13 : vector<8x128xf32>
    %cst_11 = arith.constant 0.000000e+00 : f32
    %15 = vector.broadcast %cst_11 : f32 to vector<8x128xf32>
    %16 = arith.maximumf %14, %15 : vector<8x128xf32>
    %17 = arith.truncf %16 : vector<8x128xf32> to vector<8x128xbf16>
    %c0_12 = arith.constant 0 : index
    %c0_13 = arith.constant 0 : index
    %18 = vector.load %arg6[%c0_12, %c0_13] : memref<128x4xbf16, #tpu.memory_space<vmem>>, vector<128x4xbf16>
    %cst_14 = arith.constant dense<0.000000e+00> : vector<8x4xf32>
    %19 = tpu.matmul %17, %18, %cst_14 {dimension_numbers = #tpu.dot_dimension_numbers<[1], [0], [0], [1], [0, 0, 1, 1], [], []>} : vector<8x128xbf16>, vector<128x4xbf16>, vector<8x4xf32> -> vector<8x4xf32>
    %c0_15 = arith.constant 0 : index
    %c0_16 = arith.constant 0 : index
    %20 = vector.load %arg7[%c0_15, %c0_16] : memref<1x4xf32, #tpu.memory_space<vmem>>, vector<1x4xf32>
    %21 = vector.broadcast %20 : vector<1x4xf32> to vector<8x4xf32>
    %22 = arith.addf %19, %21 : vector<8x4xf32>
    %c0_17 = arith.constant 0 : index
    %c0_18 = arith.constant 0 : index
    %23 = vector.load %arg8[%c0_17, %c0_18] : memref<8x4xf32, #tpu.memory_space<vmem>>, vector<8x4xf32>
    tpu.vector_store %arg8[%c0_17, %c0_18], %22 {strides = array<i32>} : memref<8x4xf32, #tpu.memory_space<vmem>>, vector<8x4xf32>,
    return
  }
  func.func @transform_0(%arg0: i32) -> (i32, i32) {
    %c0_i32 = arith.constant 0 : i32
    %c0_i32_0 = arith.constant 0 : i32
    return %arg0, %c0_i32 : i32, i32
  }
  func.func @transform_1(%arg0: i32) -> (i32, i32) {
    %c0_i32 = arith.constant 0 : i32
    %c0_i32_0 = arith.constant 0 : i32
    %c0_i32_1 = arith.constant 0 : i32
    return %c0_i32, %c0_i32_0 : i32, i32
  }
  func.func @transform_2(%arg0: i32) -> (i32, i32) {
    %c0_i32 = arith.constant 0 : i32
    %c0_i32_0 = arith.constant 0 : i32
    %c0_i32_1 = arith.constant 0 : i32
    return %c0_i32, %c0_i32_0 : i32, i32
  }
  func.func @transform_3(%arg0: i32) -> (i32, i32) {
    %c0_i32 = arith.constant 0 : i32
    %c0_i32_0 = arith.constant 0 : i32
    %c0_i32_1 = arith.constant 0 : i32
    return %c0_i32, %c0_i32_0 : i32, i32
  }
  func.func @transform_4(%arg0: i32) -> (i32, i32) {
    %c0_i32 = arith.constant 0 : i32
    %c0_i32_0 = arith.constant 0 : i32
    %c0_i32_1 = arith.constant 0 : i32
    return %c0_i32, %c0_i32_0 : i32, i32
  }
  func.func @transform_5(%arg0: i32) -> (i32, i32) {
    %c0_i32 = arith.constant 0 : i32
    %c0_i32_0 = arith.constant 0 : i32
    %c0_i32_1 = arith.constant 0 : i32
    return %c0_i32, %c0_i32_0 : i32, i32
  }
  func.func @transform_6(%arg0: i32) -> (i32, i32) {
    %c0_i32 = arith.constant 0 : i32
    %c0_i32_0 = arith.constant 0 : i32
    %c0_i32_1 = arith.constant 0 : i32
    return %c0_i32, %c0_i32_0 : i32, i32
  }
  func.func @transform_7(%arg0: i32) -> (i32, i32) {
    %c0_i32 = arith.constant 0 : i32
    %c0_i32_0 = arith.constant 0 : i32
    return %arg0, %c0_i32 : i32, i32
  }
}

</mosaic_0001>

<bundles_post_ra>
// kernel: tpu_custom_call.1
= control target key start
LH: loop header
LB: loop body
LE: loop exit
PB: predicated region body
PF: predicated region fallthrough
CT: control target
= control target key end

     0   :  { %12 = vsyncpa [#allocation3], 0  ;;  %s564_s0 = inlined_call_operand.hbm [shape: f32[8,63], index: 0, kind: input, shape index: {}]   ;;  %s565_s1 = inlined_call_operand.hbm [shape: bf16[63,128], index: 1, kind: input, shape index: {}]   ;;  %s566_s2 = inlined_call_operand.vmem [shape: f32[1,128], index: 2, kind: input, shape index: {}]   ;;  %s567_s3 = inlined_call_operand.vmem [shape: bf16[128,128], index: 3, kind: input, shape index: {}]   ;;  %s568_s4 = inlined_call_operand.vmem [shape: f32[1,128], index: 4, kind: input, shape index: {}]   ;;  %s569_s5 = inlined_call_operand.vmem [shape: bf16[128,4], index: 5, kind: input, shape index: {}]   ;;  %s570_s6 = inlined_call_operand.vmem [shape: f32[1,4], index: 6, kind: input, shape index: {}]   ;;  %s571_s7 = inlined_call_operand.vmem [shape: f32[8,4], index: 7, kind: output, shape index: {}]  }
   0x1   :  { %s19_s26 = sshll.u32 %s564_s0, 4  ;;  %s20_s26 = int_to_ptr.hbm [resolvable:$true] %s19_s26 }
   0x2   :  { %13 = vsyncpa [#allocation5], 0  ;;  %s453_s27 = smov [#allocation2]   ;;  %s29_s8 = sshll.u32 %s565_s1, 4  ;;  %s30_s8 = int_to_ptr.hbm [resolvable:$true] %s29_s8 }
   0x3   :  { %s21_s28 = sshll.u32 %s453_s27, 4  ;;  %s454_s9 = smov [#allocation4]   ;;  %s22_s28 = int_to_ptr.vmem [resolvable:$true] %s21_s28 }
   0x4   :  { %24 = dma.hbm_to_vmem [thread:$0]  %s20_s26, 128, %s22_s28, [#allocation3]  }
   0x5   :  { %s31_s10 = sshll.u32 %s454_s9, 4  ;;  %s455_s11 = smov 64   ;;  %s32_s10 = int_to_ptr.vmem [resolvable:$true] %s31_s10 }
   0x6   :  { %s456_s12 = smov 4  }
   0x7   :  { %37 = dma.hbm_to_vmem [thread:$0]  %s30_s8, 512, %s32_s10, [#allocation5], %s455_s11, %s455_s11, %s456_s12  }
   0x8   :  { %449 = dma.done.wait [#allocation3], 128  }
   0x9   :  { %450 = vsyncadd [#allocation3], 4294967168 }
   0xa   :  { %451 = dma.done.wait [#allocation5], 512  }
   0xb   :  { %452 = vsyncadd [#allocation5], 4294966784  ;;  %vm98_vm0 = vcmask 1046528   ;;  %vm99_vm1 = vcmask 1047552   ;;  %v457_v0 = vmov 65535   ;;  %v376_v3 = vld [vmem:[#allocation4 + $0x18] sm:$0xff] }
   0xc   :  { %v100_v1 = vsel %vm98_vm0, 4294967295, %v457_v0  ;;  %v384_v4 = vld [vmem:[%s567_s3 + $0x38] sm:$0xff]  ;;  %v383_v6 = vld [vmem:[%s567_s3 + $0x30] sm:$0xff]  ;;  %v382_v8 = vld [vmem:[%s567_s3 + $0x28] sm:$0xff]  ;;  %vm94_vm2 = vcmask 515072   ;;  %vm284_vm3 = vcmask 31744  }
   0xd   :  { %v101_v2 = vsel %vm99_vm1, %v100_v1, 0  ;;  %188 = vmatpush.bf16.msra.mxu1 %v384_v4  ;;  %v375_v7 = vld [vmem:[#allocation4 + $0x10] sm:$0xff]  ;;  %v374_v9 = vld [vmem:[#allocation4 + $0x8] sm:$0xff]  ;;  %v381_v10 = vld [vmem:[%s567_s3 + $0x20] sm:$0xff] }
   0xe   :  { %v103_v5 = vand.u32 %v376_v3, %v101_v2  ;;  %v373_v11 = vld [vmem:[#allocation4] sm:$0xff]  ;;  %v57_v12 = vld [vmem:[#allocation2] sm:$0xff]  ;;  %v380_v14 = vld [vmem:[%s567_s3 + $0x18] sm:$0xff] }
   0xf   :  { %v58_v13 = vpack.c.bf16 %v57_v12, %v57_v12  ;;  %v379_v15 = vld [vmem:[%s567_s3 + $0x10] sm:$0xff]  ;;  %v378_v16 = vld [vmem:[%s567_s3 + $0x8] sm:$0xff]  ;;  %v377_v17 = vld [vmem:[%s567_s3] sm:$0xff] }
  0x10   :  { %109 = vmatpush.bf16.msra.mxu0 %v103_v5  ;;  %v392_v18 = vld [vmem:[%s569_s5 + $0x38] sm:$0xff]  ;;  %v391_v19 = vld [vmem:[%s569_s5 + $0x30] sm:$0xff]  ;;  %v390_v20 = vld [vmem:[%s569_s5 + $0x28] sm:$0xff] }
  0x11   :  { %189 = vmatpush.bf16.msra.mxu1 %v383_v6  ;;  %271 = vmatpush.bf16.msra.mxu2 %v392_v18  ;;  %v389_v21 = vld [vmem:[%s569_s5 + $0x20] sm:$0xff]  ;;  %v388_v22 = vld [vmem:[%s569_s5 + $0x18] sm:$0xff]  ;;  %v387_v23 = vld [vmem:[%s569_s5 + $0x10] sm:$0xff] }
  0x12   :  { %v398_v24 = vld [vmem:[%s566_s2] ss:$0 sm:$0xff]  ;;  %v386_v30 = vld [vmem:[%s569_s5 + $0x8] sm:$0xff] }
  0x13   :  { %v385_v31 = vld [vmem:[%s569_s5] sm:$0xff] }
  0x14   :  { %110 = vmatpush.bf16.msra.mxu0 %v375_v7  ;;  %v399_v32 = vld [vmem:[%s568_s4] ss:$0 sm:$0xff] }
  0x15   :  { %190 = vmatpush.bf16.msra.mxu1 %v382_v8  ;;  %272 = vmatpush.bf16.msra.mxu2 %v391_v19  ;;  %v400_v38 = vld [vmem:[%s570_s6] ss:$0 sm:$0xff] }
  0x18   :  { %111 = vmatpush.bf16.msra.mxu0 %v374_v9 }
  0x19   :  { %191 = vmatpush.bf16.msra.mxu1 %v381_v10  ;;  %273 = vmatpush.bf16.msra.mxu2 %v390_v20 }
  0x1c   :  { %112 = vmatpush.bf16.msra.mxu0 %v373_v11 }
  0x1d   :  { %192 = vmatpush.bf16.msra.mxu1 %v380_v14  ;;  %274 = vmatpush.bf16.msra.mxu2 %v389_v21 }
  0x1f   :  { %308 = vmatmul.msk.bf16.vlgmr.msra.gmra.mxu0 %vm94_vm2, %v58_v13 }
  0x21   :  { %193 = vmatpush.bf16.msra.mxu1 %v379_v15  ;;  %275 = vmatpush.bf16.msra.mxu2 %v388_v22 }
  0x25   :  { %194 = vmatpush.bf16.msra.mxu1 %v378_v16  ;;  %276 = vmatpush.bf16.msra.mxu2 %v387_v23 }
  0x29   :  { %195 = vmatpush.bf16.msra.mxu1 %v377_v17  ;;  %277 = vmatpush.bf16.msra.mxu2 %v386_v30 }
  0x2d   :  { %278 = vmatpush.bf16.msra.mxu2 %v385_v31 }
  0x9c   :  { %v114_v25 = vpop.f32.mrf.mxu0 }
  0x9d   :  { %v115_v26 = vadd.f32 %v398_v24, %v114_v25 }
  0x9f   :  { %v118_v27 = vmax.f32 %v115_v26, 0.0 }
  0xa1   :  { %v119_v28 = vpack.c.bf16 %v118_v27, %v118_v27 }
  0xa3   :  { %196 = vmatmul.bf16.vlgmr.msra.gmra.mxu1 %v119_v28 }
  0xa4   :  { %v116_v29 = vpop.f32.mrf.mxu0 }
 0x120   :  { %v197_v33 = vpop.f32.mrf.mxu1 }
 0x121   :  { %v198_v34 = vadd.f32 %v399_v32, %v197_v33 }
 0x123   :  { %v201_v35 = vmax.f32 %v198_v34, 0.0 }
 0x125   :  { %v202_v36 = vpack.c.bf16 %v201_v35, %v201_v35 }
 0x127   :  { %279 = vmatmul.bf16.vlgmr.msra.gmra.mxu2 %v202_v36 }
 0x128   :  { %v199_v37 = vpop.f32.mrf.mxu1 }
 0x1aa   :  { %v280_v39 = vpop.f32.mrf.mxu2 }
 0x1ab   :  { %v281_v40 = vadd.f32 %v400_v38, %v280_v39 }
 0x1ad   :  { %285 = vst.msk [vmem:[%s571_s7] sm:$0xff] %vm284_vm3, %v281_v40 }
 0x1b2   :  { %v282_v41 = vpop.f32.mrf.mxu2 }
 0x1b3   :  { %290 = vsyncpa [#allocation3], 1 }
 0x1b4   :  { %291 = vsyncpa [#allocation5], 1 }

</bundles_post_ra>
